<compile_context>
chip_gen: v6e
topology: v6e:2x2x1
jax: 0.10.0
libtpu: 0.0.40
codegen_flags: <defaults>
</compile_context>

<pallas_src>
import functools

import numpy as np
import jax
import jax.numpy as jnp
from jax.experimental import pallas as pl
from jax.experimental.pallas import tpu as pltpu


def _round_up(x, m):
    return ((x + m - 1) // m) * m


def _rbf_kernel(dist_ref, centers_ref, out_ref, *, coef):
    # dist_ref:    (tE, 1)   f32 — one distance per edge row (sublanes)
    # centers_ref: (1, Rp)   f32 — RBF centers, lane-padded to a multiple of
    #                             128 with a far-away sentinel in the padding
    # out_ref:     (tE, Rp)  out_dtype
    d = dist_ref[...]                      # (tE, 1)
    c = centers_ref[...]                   # (1, Rp)
    radial = d - c                         # broadcast -> (tE, Rp), f32
    # Compute in f32 (VPU + one EUP exp per element), cast only at the store.
    out_ref[...] = jnp.exp(coef * radial * radial).astype(out_ref.dtype)


def rbf_layer(distance, *, low=0.0, high=30.0, gap=0.1, coef_mode="p",
              block_e=4096, out_dtype=jnp.float32, return_padded=False,
              min_grid_steps=8):
    """Pallas TPU implementation of RBFLayer.forward for dim=1.

    distance: (E,) or (E, 1) float32 per-edge distances.
    returns:  (E, n_centers) array of dtype `out_dtype`, or the padded
              (Ep, Rp) slab if return_padded=True (padding is exactly 0.0).
    """
    distance = jnp.asarray(distance, jnp.float32).reshape(-1)
    E = distance.shape[0]

    # Centers / coefficient exactly as the PyTorch module builds them.
    n_centers = int(np.ceil((high - low) / gap))
    centers_np = np.linspace(low, high, n_centers).astype(np.float32)
    gap_eff = float(centers_np[1] - centers_np[0])
    coef = (-1.0 / gap_eff) if coef_mode == "p" else (-0.5 / gap_eff ** 2)

    # Lane-dense padding of the center axis (300 -> 384) so all stores are
    # unmasked full-vreg stores. Padded centers are a far-away sentinel so the
    # corresponding exp() underflows to exactly 0.0 -> the padded slab is safe
    # for downstream consumers without any post-kernel slice.
    Rp = _round_up(n_centers, 128)
    centers_pad = np.full((1, Rp), low - 1.0e4, np.float32)
    centers_pad[0, :n_centers] = centers_np
    centers_pad = jnp.asarray(centers_pad)

    # Edge tiling: large, 16-row-aligned tiles (bf16 packs (16,128)) to
    # amortize grid-step overhead, while keeping >= min_grid_steps steps so a
    # v7x chip (2 TensorCores) has work for both cores on the parallel axis.
    tile_e = min(block_e, _round_up(max(pl.cdiv(E, min_grid_steps), 16), 16))
    Ep = _round_up(E, tile_e)
    # Padded edge rows get a far-away distance -> their output rows are 0.0.
    dist2d = jnp.pad(distance.reshape(-1, 1), ((0, Ep - E), (0, 0)),
                     constant_values=float(high) + 1.0e4)

    grid = (Ep // tile_e,)

    # Actual VMEM footprint (double-buffered): output block x2, distance
    # column x2 (the (tile_e,1) block pads to 128 lanes in VMEM), centers,
    # plus compiler headroom. Far below every generation's scoped limit.
    out_block_bytes = tile_e * Rp * np.dtype(out_dtype).itemsize
    dist_block_bytes = tile_e * 128 * 4
    centers_bytes = 8 * Rp * 4
    vmem_limit = min(2 * out_block_bytes + 2 * dist_block_bytes
                     + 2 * centers_bytes + (4 << 20), 32 << 20)

    out_pad = pl.pallas_call(
        functools.partial(_rbf_kernel, coef=float(coef)),
        out_shape=jax.ShapeDtypeStruct((Ep, Rp), out_dtype),
        grid=grid,
        in_specs=[
            pl.BlockSpec((tile_e, 1), lambda i: (i, 0)),   # per-tile distances
            pl.BlockSpec((1, Rp), lambda i: (0, 0)),       # centers (resident)
        ],
        out_specs=pl.BlockSpec((tile_e, Rp), lambda i: (i, 0)),
        compiler_params=pltpu.CompilerParams(
            dimension_semantics=("parallel",),
            vmem_limit_bytes=int(vmem_limit),
        ),
    )(dist2d, centers_pad)

    if return_padded:
        # (Ep, Rp) slab; all padded rows/columns are exactly 0.0, so the
        # consumer can zero-pad its weight rows and skip the slice entirely.
        return out_pad
    # NOTE: this slice is an extra HBM read+write pass over the result; prefer
    # return_padded=True, or jit this wrapper together with the consumer so
    # XLA fuses the slice into the consuming op.
    return out_pad[:E, :n_centers]


def reference(distance, *, low=0.0, high=30.0, gap=0.1, coef_mode="p"):
    """Pure-JAX reference mirroring the PyTorch RBFLayer semantics."""
    distance = jnp.asarray(distance, jnp.float32).reshape(-1)
    n_centers = int(np.ceil((high - low) / gap))
    centers = jnp.asarray(np.linspace(low, high, n_centers), jnp.float32)
    gap_eff = centers[1] - centers[0]
    coef = (-1.0 / gap_eff) if coef_mode == "p" else (-0.5 / gap_eff ** 2)
    radial = distance[:, None] - centers[None, :]
    return jnp.exp(coef * radial ** 2)


if __name__ == "__main__":
    E = 64  # number of edges (small example)

    key = jax.random.PRNGKey(0)
    # Per-edge distances in [0, 30), i.e. g.edata['distance'].
    distance = jax.random.uniform(key, (E,), jnp.float32, minval=0.0, maxval=30.0)

    rbf_ref = reference(distance)                                # (E, 300) f32

    # 1) f32 output: exact module semantics.
    rbf = jax.block_until_ready(rbf_layer(distance))
    assert rbf.shape == rbf_ref.shape == (E, 300), (rbf.shape, rbf_ref.shape)
    assert jnp.allclose(rbf, rbf_ref, rtol=1e-5, atol=1e-5), "f32 rbf mismatch"

    # 2) bf16 output: halves the HBM writeback of this write-bound kernel.
    rbf_bf16 = jax.block_until_ready(rbf_layer(distance, out_dtype=jnp.bfloat16))
    assert rbf_bf16.dtype == jnp.bfloat16
    assert jnp.allclose(rbf_bf16.astype(jnp.float32), rbf_ref,
                        rtol=2e-2, atol=2e-2), "bf16 rbf mismatch"

    # 3) Padded slab (no post-kernel slice pass): padding is exactly zero.
    rbf_pad = jax.block_until_ready(rbf_layer(distance, return_padded=True))
    assert rbf_pad.shape[1] == 384, rbf_pad.shape
    assert jnp.allclose(rbf_pad[:E, :300], rbf_ref, rtol=1e-5, atol=1e-5)
    assert bool(jnp.all(rbf_pad[:, 300:] == 0.0)), "padded columns not zero"
    assert bool(jnp.all(rbf_pad[E:, :] == 0.0)), "padded rows not zero"

    print("KERNEL_OK")
</pallas_src>

<mosaic_0001>
module attributes {stable_mosaic.version = 11 : i64} {
  func.func @_rbf_kernel(%arg0: i32, %arg1: memref<16x1xf32, #tpu.memory_space<vmem>>, %arg2: memref<1x384xf32, #tpu.memory_space<vmem>>, %arg3: memref<16x384xf32, #tpu.memory_space<vmem>>) attributes {dimension_semantics = [#tpu.dimension_semantics<parallel>], iteration_bounds = array<i64: 4>, scalar_prefetch = 0 : i64, scratch_operands = 0 : i64, tpu.core_type = #tpu.core_type<tc>, window_params = [{transform_indices = @transform_0, window_bounds = array<i64: 16, 1>}, {pipeline_mode = #tpu.pipeline_mode<synchronous>, transform_indices = @transform_1, window_bounds = array<i64: 1, 384>}, {transform_indices = @transform_2, window_bounds = array<i64: 16, 384>}]} {
    %c0 = arith.constant 0 : index
    %c0_0 = arith.constant 0 : index
    %0 = vector.load %arg1[%c0, %c0_0] : memref<16x1xf32, #tpu.memory_space<vmem>>, vector<16x1xf32>
    %c0_1 = arith.constant 0 : index
    %c0_2 = arith.constant 0 : index
    %1 = vector.load %arg2[%c0_1, %c0_2] : memref<1x384xf32, #tpu.memory_space<vmem>>, vector<1x384xf32>
    %2 = vector.broadcast %0 : vector<16x1xf32> to vector<16x384xf32>
    %3 = vector.broadcast %1 : vector<1x384xf32> to vector<16x384xf32>
    %4 = arith.subf %2, %3 : vector<16x384xf32>
    %cst = arith.constant -9.96666622 : f32
    %5 = vector.broadcast %cst : f32 to vector<16x384xf32>
    %6 = arith.mulf %5, %4 : vector<16x384xf32>
    %7 = arith.mulf %6, %4 : vector<16x384xf32>
    %8 = math.exp %7 : vector<16x384xf32>
    %c0_3 = arith.constant 0 : index
    %c0_4 = arith.constant 0 : index
    %9 = vector.load %arg3[%c0_3, %c0_4] : memref<16x384xf32, #tpu.memory_space<vmem>>, vector<16x384xf32>
    tpu.vector_store %arg3[%c0_3, %c0_4], %8 {strides = array<i32>} : memref<16x384xf32, #tpu.memory_space<vmem>>, vector<16x384xf32>,
    return
  }
  func.func @transform_0(%arg0: i32) -> (i32, i32) {
    %c0_i32 = arith.constant 0 : i32
    %c0_i32_0 = arith.constant 0 : i32
    return %arg0, %c0_i32 : i32, i32
  }
  func.func @transform_1(%arg0: i32) -> (i32, i32) {
    %c0_i32 = arith.constant 0 : i32
    %c0_i32_0 = arith.constant 0 : i32
    %c0_i32_1 = arith.constant 0 : i32
    return %c0_i32, %c0_i32_0 : i32, i32
  }
  func.func @transform_2(%arg0: i32) -> (i32, i32) {
    %c0_i32 = arith.constant 0 : i32
    %c0_i32_0 = arith.constant 0 : i32
    return %arg0, %c0_i32 : i32, i32
  }
}

</mosaic_0001>

<bundles_post_ra>
// kernel: tpu_custom_call.1
= control target key start
LH: loop header
LB: loop body
LE: loop exit
PB: predicated region body
PF: predicated region fallthrough
CT: control target
= control target key end

     0   :  { %7 = vsyncpa [#allocation3], 0  ;;  %s540_s0 = inlined_call_operand.vmem [shape: f32[64,1], index: 0, kind: input, shape index: {}]   ;;  %s541_s1 = inlined_call_operand.vmem [shape: f32[1,384], index: 1, kind: input, shape index: {}]   ;;  %s542_s2 = inlined_call_operand.hbm [shape: f32[64,384], index: 2, kind: output, shape index: {}]  }
   0x1   :  { %9 = vsyncpa [#allocation3 + $0x1], 0  ;;  %s436_s9 = smov 0   ;;  %s438_s10 = smov 0  }
   0x2   :  { %s440_s11 = smov 0   ;;  %s442_s12 = smov 0  }
   0x3 LB: > { %s457_s13 = sadd.s32 4294967295, %s415_s12   ;;  %s287_s14 = sadd.s32 4294967294, %s415_s12   ;;  %s415_s12 = sphi %s442_s12, %s548_s12   ;;  %s411_s11 = sphi %s440_s11, %s547_s11   ;;  %s407_s10 = sphi %s438_s10, %s546_s10   ;;  %s403_s9 = sphi %s436_s9, %s545_s9  }
   0x4   : > { %s461_s15 = sadd.s32 1, %s415_s12   ;;  %s69_s16 = sadd.s32 1, %s411_s11 }
   0x5   : > { %s66_s17 = ssub.s32 %s415_s12, %s461_s15  ;;  %p79_p0 = scmp.ne.s32.totalorder %s411_s11, %s407_s10 }
   0x6   : > { %p67_p1 = scmp.eq.s32.totalorder %s66_s17, 0  ;;  %p80_p2 = scmp.eq.s32.totalorder %s457_s13, 3 }
   0x7   : > { %p85_p3 = scmp.ne.s32.totalorder %s407_s10, %s403_s9  ;;  %p86_p4 = scmp.eq.s32.totalorder %s287_s14, 3 }
   0x8   : > { %s472_s18 = scalar_select %p67_p1, %s411_s11, %s69_s16  }
   0x9   : > { %p474_p5 = por %p80_p2, %p79_p0  ;;  %p478_p6 = por %p86_p4, %p85_p3 }
   0xa   : > { %p290_p7 = scmp.ge.s32.totalorder %s415_s12, 1  ;;  %p116_p8 = scmp.lt.s32.totalorder %s415_s12, 5 }
   0xc   : > { %p117_p9 = pnand %p290_p7, %p116_p8 }
   0xd   : > { %s291_s21 = sshll.u32 (!%p117_p9), %s457_s13, 1  ;;  %s135_s28 = sand.u32 (!%p117_p9), 1, %s407_s10  }
   0xe   : > { %120 = sbr.rel (%p117_p9) target bundleno = 190 (0xbe), region = 28  ;;  %p139_p10 = scmp.lt.s32.totalorder (!%p117_p9), %s291_s21, 7 }
   0xf   : > { %s298_s29 = smul.u32 (!%p117_p9), 48, %s135_s28  ;;  %s500_s8 = scalar_lea.sflag (!%p117_p9), [#allocation3], %s135_s28 }
  0x10   : > { %s299_s3 = smul.u32 (!%p117_p9), 768, %s457_s13  ;;  %s418_s14 = smov (!%p117_p9), [#allocation2]  }
  0x11   : > { %s137_s30 = scalar_lea.vmem (!%p117_p9), [#allocation2], %s298_s29  ;;  %s359_s16 = sshll.u32 (!%p117_p9), %s418_s14, 4  ;;  %s360_s16 = int_to_ptr.vmem [resolvable:$false] %s359_s16 }
  0x12   : > { %s225_s4 = sshll.u32 (!%p117_p9), %s137_s30, 4  ;;  %s496_s7 = scalar_lea.hbm (!%p117_p9), %s542_s2, %s299_s3  ;;  %s498_s4 = int_to_ptr.vmem [resolvable:$true] %s225_s4 }
  0x13   : > { %v417_v0 = vmov 0   ;;  %s550_s21 = smov (!%p139_p10, %s291_s21), 7  ;;  %v159_v3 = vlaneseq  ;;  %v147_v8 = vld [vmem:[%s541_s1] sm:$0x7]  ;;  %s355_s13 = scalar_lea.vmem %s498_s4, 768 }
  0x14   : > { %342 = vset.pattern.permute.xlu0 %v417_v0  ;;  %s292_s22 = sshll.u32 %s550_s21, 3  ;;  %p356_p11 = scmp.ne.s32.totalorder %s498_s4, %s355_s13 }
  0x15   : > { %s142_s25 = scalar_lea.vmem %s540_s0, %s292_s22  ;;  %v160_v4 = vshrl.u32 %v159_v3, 7  ;;  %s361_s17 = scalar_lea.vmem %s360_s16, 1536 }
  0x16   : > { %v145_v1 = vld [vmem:[%s142_s25] sm:$0xff]  ;;  %v146_v2 = vld [vmem:[%s142_s25 + $0x8] sm:$0xff]  ;;  %p357_p12 = pnand %p356_p11, %p474_p5  ;;  %p362_p0 = scmp.lt.s32.totalorder %s498_s4, %s360_s16 }
  0x17   : > { %150 = vperm.xlu0 %342, %v145_v1   ;;  %v161_v5 = vsub.s32 0, %v160_v4  ;;  %v165_v6 = vsub.s32 1, %v160_v4  ;;  %v169_v7 = vsub.s32 2, %v160_v4  ;;  %p363_p1 = scmp.lt.s32.totalorder %s361_s17, %s355_s13 }
  0x18   : > { %p358_p13 = pneg %p357_p12 }
  0x19   : > { %v162_v9 = vrot.slane %v147_v8, %v161_v5  ;;  %v166_v10 = vrot.slane %v147_v8, %v165_v6  ;;  %v170_v11 = vrot.slane %v147_v8, %v169_v7  ;;  %p364_p2 = por %p363_p1, %p362_p0 }
  0x1b   : > { %155 = vperm.xlu0 %342, %v146_v2   ;;  %p365_p3 = pnand %p364_p2, %p358_p13 }
  0x92   : > { %v151_v12 = vpop.permute.xlu0 %150 }
  0x93   : > { %v174_v13 = vsub.f32 %v151_v12, %v162_v9  ;;  %v175_v14 = vsub.f32 %v151_v12, %v166_v10  ;;  %v176_v15 = vsub.f32 %v151_v12, %v170_v11 }
  0x95   : > { %v180_v16 = vmul.f32 -9.966666, %v174_v13  ;;  %v181_v17 = vmul.f32 -9.966666, %v175_v14  ;;  %v182_v18 = vmul.f32 -9.966666, %v176_v15 }
  0x96   : > { %v156_v19 = vpop.permute.xlu0 %155 }
  0x97   : > { %v186_v20 = vmul.f32 %v180_v16, %v174_v13  ;;  %v187_v21 = vmul.f32 %v181_v17, %v175_v14  ;;  %v188_v22 = vmul.f32 %v182_v18, %v176_v15  ;;  %v177_v23 = vsub.f32 %v156_v19, %v162_v9 }
  0x98   : > { %v178_v24 = vsub.f32 %v156_v19, %v166_v10  ;;  %v179_v25 = vsub.f32 %v156_v19, %v170_v11 }
  0x99   : > { %v192_v26 = vmul.f32 1.442695, %v186_v20  ;;  %v194_v27 = vmul.f32 1.442695, %v187_v21  ;;  %v196_v28 = vmul.f32 1.442695, %v188_v22 }
  0x9a   : > { %v183_v29 = vmul.f32 -9.966666, %v177_v23  ;;  %v184_v30 = vmul.f32 -9.966666, %v178_v24  ;;  %v185_v31 = vmul.f32 -9.966666, %v179_v25 }
  0x9b   : > { %343 = vpow2.f32 %v192_v26 }
  0x9c   : > { %345 = vpow2.f32 %v194_v27  ;;  %v189_v32 = vmul.f32 %v183_v29, %v177_v23  ;;  %v190_v33 = vmul.f32 %v184_v30, %v178_v24  ;;  %v191_v34 = vmul.f32 %v185_v31, %v179_v25 }
  0x9d   : > { %347 = vpow2.f32 %v196_v28 }
  0x9e   : > { %v198_v35 = vmul.f32 1.442695, %v189_v32  ;;  %v200_v36 = vmul.f32 1.442695, %v190_v33  ;;  %v202_v37 = vmul.f32 1.442695, %v191_v34 }
  0xa0   : > { %349 = vpow2.f32 %v198_v35 }
  0xa1   : > { %351 = vpow2.f32 %v200_v36 }
  0xa2   : > { %353 = vpow2.f32 %v202_v37 }
  0xa8   : > { %v344_v38 = vpop.eup %343 }
  0xa9   : > { %v346_v39 = vpop.eup %345  ;;  %204 = vst [vmem:[%s137_s30] sm:$0xff] %v344_v38 }
  0xaa   : > { %v348_v40 = vpop.eup %347  ;;  %205 = vst [vmem:[%s137_s30 + $0x8] sm:$0xff] %v346_v39 }
  0xab   : > { %206 = vst [vmem:[%s137_s30 + $0x10] sm:$0xff] %v348_v40 }
  0xad   : > { %v350_v41 = vpop.eup %349 }
  0xae   : > { %v352_v42 = vpop.eup %351  ;;  %207 = vst [vmem:[%s137_s30 + $0x18] sm:$0xff] %v350_v41 }
  0xaf   : > { %v354_v43 = vpop.eup %353  ;;  %208 = vst [vmem:[%s137_s30 + $0x20] sm:$0xff] %v352_v42 }
  0xb0   : > { %209 = vst [vmem:[%s137_s30 + $0x28] sm:$0xff] %v354_v43 }
  0xb1   : > { %368 = shalt.err (!%p365_p3)
}
  0xb2   : > { %s369_s21 = scalar_lea.hbm %s496_s7, 768  ;;  %s373_s24 = scalar_lea.hbm %s542_s2, 3072 }
  0xb3   : > { %p370_p4 = scmp.ne.s32.totalorder %s496_s7, %s369_s21  ;;  %p374_p9 = scmp.lt.s32.totalorder %s496_s7, %s542_s2 }
  0xb4   : > { %p375_p10 = scmp.lt.s32.totalorder %s373_s24, %s369_s21 }
  0xb5   : > { %p371_p7 = pnand %p370_p4, %p474_p5 }
  0xb6   : > { %p376_p11 = por %p375_p10, %p374_p9 }
  0xb7   : > { %p372_p8 = pneg %p371_p7 }
  0xb9   : > { %p377_p12 = pnand %p376_p11, %p372_p8 }
  0xbb   : > { %380 = shalt.err (!%p377_p12)
}
  0xbc   : > { %s419_s27 = smov 384   ;;  %s420_s28 = smov 24  }
  0xbd   : > { %300 = dma.vmem_to_hbm [thread:$0]  (%p474_p5), %s498_s4, 768, %s496_s7, %s500_s8, %s419_s27, %s419_s27, %s420_s28  }
  0xbe PF: > { %p306_p13 = scmp.ge.s32.totalorder %s415_s12, 2  ;;  %s240_s29 = sand.u32 1, %s403_s9  }
  0xbf   : > { %s241_s30 = scalar_lea.sflag [#allocation3], %s240_s29 }
  0xc0   : > { %p303_p0 = pnand %p306_p13, %p478_p6 }
  0xc2   : > { %p304_p1 = pneg %p303_p0 }
  0xc4   : > { %398 = dma.done.wait (%p304_p1), %s241_s30, 768  }
  0xc5   : > { %400 = vsyncadd (%p304_p1), %s241_s30, 4294966528  ;;  %p12_p2 = scmp.ge.s32.totalorder %s461_s15, 6   ;;  %s545_s9 = smov %s407_s10 }
  0xc6   : > { %s546_s10 = smov %s411_s11  ;;  %s547_s11 = smov %s472_s18 }
  0xc7   : > { %s548_s12 = smov %s461_s15  ;;  %14 = sbr.rel (!%p12_p2) target bundleno = 3 (0x3), region = 63 }
  0xcc   :  { %246 = vsyncpa [#allocation3], 1 }
  0xcd   :  { %248 = vsyncpa [#allocation3 + $0x1], 1 }

</bundles_post_ra>
